<compile_context>
chip_gen: v7x
topology: tpu7x:2x2x1
jax: 0.10.0
libtpu: 0.0.40
codegen_flags: <defaults>
</compile_context>

<pallas_src>
import jax
import jax.numpy as jnp
from jax.experimental import pallas as pl
from jax.experimental.pallas import tpu as pltpu


def _round_up(x: int, m: int) -> int:
    return ((x + m - 1) // m) * m


# ---------------------------------------------------------------------------
# Pallas kernel: full forward hot path (lane-dense logits tile)
# ---------------------------------------------------------------------------
def scalar_nn_kernel(x_ref, w1_ref, b1_ref, w2_ref, b2_ref, out_ref):
    # x:   (TM, D_in)        w1: (D_in, HIDDEN)    b1: (1, HIDDEN)
    # w2:  (HIDDEN, LANE)    b2: (1, LANE)         out: (TM, LANE)   LANE = 128-padded classes
    x = x_ref[...]

    h = jnp.dot(x, w1_ref[...], preferred_element_type=jnp.float32) + b1_ref[...]
    h = jnp.maximum(h, 0.0)  # ReLU on the VPU

    logits = jnp.dot(h, w2_ref[...], preferred_element_type=jnp.float32) + b2_ref[...]

    # Lane-dense store of the whole (padded) logits tile; class selection
    # happens in the wrapper, outside the kernel store path.
    out_ref[...] = logits.astype(out_ref.dtype)


# ---------------------------------------------------------------------------
# Wrapper
# ---------------------------------------------------------------------------
def scalar_nn_forward(x_nchw, w1, b1, w2, b2, class_val, *, tm=256):
    """Pallas implementation of Scalar_NN.forward.

    tm: batch tile (rows per grid step).  256 is MXU-aligned for v6e/v7x;
        use 128 on v5e.  Shrinks automatically for small batches.
    """
    B = x_nchw.shape[0]
    d_in = 1
    for d in x_nchw.shape[1:]:
        d_in *= d
    x2d = x_nchw.reshape(B, d_in)  # glue: flatten NCHW row-major (matches torch .view)

    hidden = w1.shape[1]
    num_classes = w2.shape[1]

    # Zero-pad the class dimension to a full 128-lane width so the output
    # store is lane-dense (the padded lanes cost ~nothing and are sliced off).
    lane = _round_up(max(num_classes, 1), 128)
    w2_p = jnp.zeros((hidden, lane), dtype=w2.dtype).at[:, :num_classes].set(w2)
    b2_p = jnp.zeros((1, lane), dtype=b2.dtype).at[:, :num_classes].set(
        b2.reshape(1, num_classes)
    )
    b1_2d = b1.reshape(1, hidden)

    # Batch tiling: tile rows, pad B up to a multiple of the tile.
    tm_eff = min(tm, _round_up(B, 8))
    b_pad = _round_up(B, tm_eff)
    if b_pad != B:
        x2d = jnp.pad(x2d, ((0, b_pad - B), (0, 0)))

    grid = (b_pad // tm_eff,)

    logits = pl.pallas_call(
        scalar_nn_kernel,
        out_shape=jax.ShapeDtypeStruct((b_pad, lane), jnp.float32),
        grid=grid,
        in_specs=[
            # Batch-tiled activations.
            pl.BlockSpec((tm_eff, d_in), lambda i: (i, 0)),
            # Weights / biases: same block every step -> stay resident in VMEM.
            pl.BlockSpec((d_in, hidden), lambda i: (0, 0)),
            pl.BlockSpec((1, hidden), lambda i: (0, 0)),
            pl.BlockSpec((hidden, lane), lambda i: (0, 0)),
            pl.BlockSpec((1, lane), lambda i: (0, 0)),
        ],
        out_specs=pl.BlockSpec((tm_eff, lane), lambda i: (i, 0)),
        compiler_params=pltpu.CompilerParams(
            # Batch tiles are independent -> parallel (megacore split on v7x).
            dimension_semantics=("parallel",),
        ),
    )(x2d, w1, b1_2d, w2_p, b2_p)

    # network(x)[:, class_val].reshape(-1, 1): cheap slice on the JAX side.
    return logits[:B, class_val:class_val + 1]


# ---------------------------------------------------------------------------
# Main
# ---------------------------------------------------------------------------
if __name__ == "__main__":
    # Small MNIST-like shapes (kernel itself tiles arbitrary batch sizes).
    B, C, H, W = 32, 1, 16, 16
    D_IN = C * H * W           # 256
    HIDDEN = 128
    NUM_CLASSES = 10
    CLASS_VAL = 3

    key = jax.random.PRNGKey(0)
    kx, k1, kb1, k2, kb2 = jax.random.split(key, 5)

    x = jax.random.normal(kx, (B, C, H, W), dtype=jnp.float32)

    # Deterministic synthetic parameters (torch Linear-style fan-in scaling).
    w1 = jax.random.normal(k1, (D_IN, HIDDEN), dtype=jnp.float32) * (1.0 / D_IN ** 0.5)
    b1 = jax.random.normal(kb1, (1, HIDDEN), dtype=jnp.float32) * 0.01
    w2 = jax.random.normal(k2, (HIDDEN, NUM_CLASSES), dtype=jnp.float32) * (1.0 / HIDDEN ** 0.5)
    b2 = jax.random.normal(kb2, (1, NUM_CLASSES), dtype=jnp.float32) * 0.01

    out = scalar_nn_forward(x, w1, b1, w2, b2, CLASS_VAL)
    out = jax.block_until_ready(out)

    # Pure-JAX reference for sanity.
    x2d = x.reshape(B, D_IN)
    ref = (jnp.maximum(x2d @ w1 + b1, 0.0) @ w2 + b2)[:, CLASS_VAL].reshape(-1, 1)
    assert out.shape == (B, 1)
    assert jnp.allclose(out, ref, atol=1e-5, rtol=1e-5)

    print("KERNEL_OK")
</pallas_src>

<mosaic_0001>
module attributes {stable_mosaic.version = 11 : i64} {
  func.func @scalar_nn_kernel(%arg0: i32, %arg1: memref<32x256xf32, #tpu.memory_space<vmem>>, %arg2: memref<256x128xf32, #tpu.memory_space<vmem>>, %arg3: memref<1x128xf32, #tpu.memory_space<vmem>>, %arg4: memref<128x128xf32, #tpu.memory_space<vmem>>, %arg5: memref<1x128xf32, #tpu.memory_space<vmem>>, %arg6: memref<32x128xf32, #tpu.memory_space<vmem>>) attributes {dimension_semantics = [#tpu.dimension_semantics<parallel>], iteration_bounds = array<i64: 1>, scalar_prefetch = 0 : i64, scratch_operands = 0 : i64, tpu.core_type = #tpu.core_type<tc>, window_params = [{transform_indices = @transform_0, window_bounds = array<i64: 32, 256>}, {pipeline_mode = #tpu.pipeline_mode<synchronous>, transform_indices = @transform_1, window_bounds = array<i64: 256, 128>}, {pipeline_mode = #tpu.pipeline_mode<synchronous>, transform_indices = @transform_2, window_bounds = array<i64: 1, 128>}, {pipeline_mode = #tpu.pipeline_mode<synchronous>, transform_indices = @transform_3, window_bounds = array<i64: 128, 128>}, {pipeline_mode = #tpu.pipeline_mode<synchronous>, transform_indices = @transform_4, window_bounds = array<i64: 1, 128>}, {transform_indices = @transform_5, window_bounds = array<i64: 32, 128>}]} {
    %c0 = arith.constant 0 : index
    %c0_0 = arith.constant 0 : index
    %0 = vector.load %arg1[%c0, %c0_0] : memref<32x256xf32, #tpu.memory_space<vmem>>, vector<32x256xf32>
    %c0_1 = arith.constant 0 : index
    %c0_2 = arith.constant 0 : index
    %1 = vector.load %arg2[%c0_1, %c0_2] : memref<256x128xf32, #tpu.memory_space<vmem>>, vector<256x128xf32>
    %cst = arith.constant dense<0.000000e+00> : vector<32x128xf32>
    %2 = tpu.matmul %0, %1, %cst {dimension_numbers = #tpu.dot_dimension_numbers<[1], [0], [0], [1], [0, 0, 1, 1], [], []>} : vector<32x256xf32>, vector<256x128xf32>, vector<32x128xf32> -> vector<32x128xf32>
    %c0_3 = arith.constant 0 : index
    %c0_4 = arith.constant 0 : index
    %3 = vector.load %arg3[%c0_3, %c0_4] : memref<1x128xf32, #tpu.memory_space<vmem>>, vector<1x128xf32>
    %4 = vector.broadcast %3 : vector<1x128xf32> to vector<32x128xf32>
    %5 = arith.addf %2, %4 : vector<32x128xf32>
    %cst_5 = arith.constant 0.000000e+00 : f32
    %6 = vector.broadcast %cst_5 : f32 to vector<32x128xf32>
    %7 = arith.maximumf %5, %6 : vector<32x128xf32>
    %c0_6 = arith.constant 0 : index
    %c0_7 = arith.constant 0 : index
    %8 = vector.load %arg4[%c0_6, %c0_7] : memref<128x128xf32, #tpu.memory_space<vmem>>, vector<128x128xf32>
    %cst_8 = arith.constant dense<0.000000e+00> : vector<32x128xf32>
    %9 = tpu.matmul %7, %8, %cst_8 {dimension_numbers = #tpu.dot_dimension_numbers<[1], [0], [0], [1], [0, 0, 1, 1], [], []>} : vector<32x128xf32>, vector<128x128xf32>, vector<32x128xf32> -> vector<32x128xf32>
    %c0_9 = arith.constant 0 : index
    %c0_10 = arith.constant 0 : index
    %10 = vector.load %arg5[%c0_9, %c0_10] : memref<1x128xf32, #tpu.memory_space<vmem>>, vector<1x128xf32>
    %11 = vector.broadcast %10 : vector<1x128xf32> to vector<32x128xf32>
    %12 = arith.addf %9, %11 : vector<32x128xf32>
    %c0_11 = arith.constant 0 : index
    %c0_12 = arith.constant 0 : index
    %13 = vector.load %arg6[%c0_11, %c0_12] : memref<32x128xf32, #tpu.memory_space<vmem>>, vector<32x128xf32>
    tpu.vector_store %arg6[%c0_11, %c0_12], %12 {strides = array<i32>} : memref<32x128xf32, #tpu.memory_space<vmem>>, vector<32x128xf32>,
    return
  }
  func.func @transform_0(%arg0: i32) -> (i32, i32) {
    %c0_i32 = arith.constant 0 : i32
    %c0_i32_0 = arith.constant 0 : i32
    return %arg0, %c0_i32 : i32, i32
  }
  func.func @transform_1(%arg0: i32) -> (i32, i32) {
    %c0_i32 = arith.constant 0 : i32
    %c0_i32_0 = arith.constant 0 : i32
    %c0_i32_1 = arith.constant 0 : i32
    return %c0_i32, %c0_i32_0 : i32, i32
  }
  func.func @transform_2(%arg0: i32) -> (i32, i32) {
    %c0_i32 = arith.constant 0 : i32
    %c0_i32_0 = arith.constant 0 : i32
    %c0_i32_1 = arith.constant 0 : i32
    return %c0_i32, %c0_i32_0 : i32, i32
  }
  func.func @transform_3(%arg0: i32) -> (i32, i32) {
    %c0_i32 = arith.constant 0 : i32
    %c0_i32_0 = arith.constant 0 : i32
    %c0_i32_1 = arith.constant 0 : i32
    return %c0_i32, %c0_i32_0 : i32, i32
  }
  func.func @transform_4(%arg0: i32) -> (i32, i32) {
    %c0_i32 = arith.constant 0 : i32
    %c0_i32_0 = arith.constant 0 : i32
    %c0_i32_1 = arith.constant 0 : i32
    return %c0_i32, %c0_i32_0 : i32, i32
  }
  func.func @transform_5(%arg0: i32) -> (i32, i32) {
    %c0_i32 = arith.constant 0 : i32
    %c0_i32_0 = arith.constant 0 : i32
    return %arg0, %c0_i32 : i32, i32
  }
}

</mosaic_0001>

<bundles_post_ra>
// kernel: tpu_custom_call.1
= control target key start
LH: loop header
LB: loop body
LE: loop exit
PB: predicated region body
PF: predicated region fallthrough
CT: control target
= control target key end

     0   :  { %10 = vsyncpa [#allocation3], 0  ;;  %s699_s0 = inlined_call_operand.hbm [shape: f32[32,256], index: 0, kind: input, shape index: {}]   ;;  %s700_s1 = inlined_call_operand.hbm [shape: f32[256,128], index: 1, kind: input, shape index: {}]   ;;  %s701_s2 = inlined_call_operand.vmem [shape: f32[1,128], index: 2, kind: input, shape index: {}]   ;;  %s702_s3 = inlined_call_operand.hbm [shape: f32[128,128], index: 3, kind: input, shape index: {}]   ;;  %s703_s4 = inlined_call_operand.vmem [shape: f32[1,128], index: 4, kind: input, shape index: {}]   ;;  %s704_s5 = inlined_call_operand.hbm [shape: f32[32,128], index: 5, kind: output, shape index: {}]  }
   0x1   :  { %11 = vsyncpa [#allocation6], 0 }
   0x2   :  { %12 = vsyncpa [#allocation4], 0  ;;  %s598_s18 = smov [#allocation5]   ;;  %s504_s22 = scalar_lea.hbm %s700_s1, 4096 }
   0x3   :  { %s30_s19 = sshll.u32 %s598_s18, 4  ;;  %p505_p0 = scmp.ne.s32.totalorder %s700_s1, %s504_s22  ;;  %s31_s19 = int_to_ptr.vmem [resolvable:$true] %s30_s19 }
   0x4   :  { %p508_p1 = scmp.lt.u32.totalorder %s504_s22, %s700_s1 }
   0x6   :  { %p510_p2 = pnand %p508_p1, %p505_p0 }
   0x8   :  { %513 = shalt.err (!%p510_p2)
}
   0x9   :  { %s514_s27 = scalar_lea.vmem %s31_s19, 4096  ;;  %p519_p4 = scmp.lt.s32.totalorder %s31_s19, %s31_s19 }
   0xa   :  { %p515_p3 = scmp.ne.s32.totalorder %s31_s19, %s514_s27  ;;  %p520_p5 = scmp.lt.s32.totalorder %s514_s27, %s514_s27 }
   0xc   :  { %p521_p6 = por %p520_p5, %p519_p4 }
   0xe   :  { %p522_p7 = pnand %p521_p6, %p515_p3 }
  0x10   :  { %525 = shalt.err (!%p522_p7)
}
  0x11   :  { %s599_s28 = smov 128   ;;  %s600_s29 = smov 8  }
  0x12   :  { %36 = dma.hbm_to_vmem [thread:$0]  %s700_s1, 4096, %s31_s19, [#allocation6], %s599_s28, %s599_s28, %s600_s29  }
  0x13   :  { %s601_s7 = smov [#allocation2]   ;;  %s526_s11 = scalar_lea.hbm %s699_s0, 1024 }
  0x14   :  { %s18_s8 = sshll.u32 %s601_s7, 4  ;;  %p527_p8 = scmp.ne.s32.totalorder %s699_s0, %s526_s11  ;;  %s19_s8 = int_to_ptr.vmem [resolvable:$true] %s18_s8 }
  0x15   :  { %p530_p9 = scmp.lt.u32.totalorder %s526_s11, %s699_s0 }
  0x17   :  { %p532_p10 = pnand %p530_p9, %p527_p8 }
  0x19   :  { %535 = shalt.err (!%p532_p10)
}
  0x1a   :  { %s536_s16 = scalar_lea.vmem %s19_s8, 1024  ;;  %p541_p12 = scmp.lt.s32.totalorder %s19_s8, %s19_s8 }
  0x1b   :  { %p537_p11 = scmp.ne.s32.totalorder %s19_s8, %s536_s16  ;;  %p542_p13 = scmp.lt.s32.totalorder %s536_s16, %s536_s16 }
  0x1d   :  { %p543_p0 = por %p542_p13, %p541_p12 }
  0x1f   :  { %p544_p1 = pnand %p543_p0, %p537_p11 }
  0x21   :  { %547 = shalt.err (!%p544_p1)
}
  0x22   :  { %s602_s1 = smov 256   ;;  %s603_s17 = smov 16  }
  0x23   :  { %24 = dma.hbm_to_vmem [thread:$0]  %s699_s0, 1024, %s19_s8, [#allocation3], %s602_s1, %s602_s1, %s603_s17  }
  0x24   :  { %s604_s20 = smov [#allocation7]   ;;  %s548_s24 = scalar_lea.hbm %s702_s3, 2048 }
  0x25   :  { %s44_s21 = sshll.u32 %s604_s20, 4  ;;  %p549_p2 = scmp.ne.s32.totalorder %s702_s3, %s548_s24  ;;  %s45_s21 = int_to_ptr.vmem [resolvable:$true] %s44_s21 }
  0x26   :  { %p552_p3 = scmp.lt.u32.totalorder %s548_s24, %s702_s3 }
  0x28   :  { %p554_p4 = pnand %p552_p3, %p549_p2 }
  0x2a   :  { %557 = shalt.err (!%p554_p4)
}
  0x2b   :  { %s558_s6 = scalar_lea.vmem %s45_s21, 2048  ;;  %p563_p6 = scmp.lt.s32.totalorder %s45_s21, %s45_s21 }
  0x2c   :  { %p559_p5 = scmp.ne.s32.totalorder %s45_s21, %s558_s6  ;;  %p564_p7 = scmp.lt.s32.totalorder %s558_s6, %s558_s6 }
  0x2e   :  { %p565_p8 = por %p564_p7, %p563_p6 }
  0x30   :  { %p566_p9 = pnand %p565_p8, %p559_p5 }
  0x32   :  { %569 = shalt.err (!%p566_p9)
}
  0x33   :  { %50 = dma.hbm_to_vmem [thread:$0]  %s702_s3, 2048, %s45_s21, [#allocation6], %s599_s28, %s599_s28, %s600_s29  }
  0x34   :  { %592 = dma.done.wait [#allocation3], 1024  }
  0x35   :  { %593 = vsyncadd [#allocation3], 4294966272 }
  0x36   :  { %594 = dma.done.wait [#allocation6], 6144  }
  0x37   :  { %595 = vsyncadd [#allocation6], 4294961152  ;;  %v86_v0 = vld [vmem:[#allocation5 + $0x80] sm:$0xff]  ;;  %v87_v1 = vld [vmem:[#allocation5 + $0x88] sm:$0xff]  ;;  %s605_s10 = smov [#allocation8]  }
  0x38   :  { %v70_v2 = vld [vmem:[#allocation5] sm:$0xff]  ;;  %v432_v3 = vpack.c.bf16 %v87_v1, %v86_v0  ;;  %v71_v4 = vld [vmem:[#allocation5 + $0x8] sm:$0xff]  ;;  %v88_v5 = vld [vmem:[#allocation5 + $0x90] sm:$0xff]  ;;  %s315_s11 = sshll.u32 %s605_s10, 4  ;;  %s316_s11 = int_to_ptr.vmem [resolvable:$true] %s315_s11 }
  0x39   :  { %v89_v6 = vld [vmem:[#allocation5 + $0x98] sm:$0xff]  ;;  %v434_v7 = vpack.c.bf16 %v71_v4, %v70_v2  ;;  %v72_v9 = vld [vmem:[#allocation5 + $0x10] sm:$0xff]  ;;  %v90_v11 = vld [vmem:[#allocation5 + $0xa0] sm:$0xff]  ;;  %s570_s12 = scalar_lea.vmem %s316_s11, 512  ;;  %p575_p11 = scmp.lt.s32.totalorder %s316_s11, %s316_s11 }
  0x3a   :  { %v436_v8 = vpack.c.bf16 %v89_v6, %v88_v5  ;;  %v73_v10 = vld [vmem:[#allocation5 + $0x18] sm:$0xff]  ;;  %433 = vmatprep.subr.bf16.mxu0 %v432_v3  ;;  %v91_v12 = vld [vmem:[#allocation5 + $0xa8] sm:$0xff]  ;;  %v74_v15 = vld [vmem:[#allocation5 + $0x20] sm:$0xff]  ;;  %p571_p10 = scmp.ne.s32.totalorder %s316_s11, %s570_s12  ;;  %p576_p12 = scmp.lt.s32.totalorder %s570_s12, %s570_s12 }
  0x3b   :  { %435 = vmatpush3.bf16.msra.mxu0 %v434_v7  ;;  %v438_v13 = vpack.c.bf16 %v73_v10, %v72_v9  ;;  %v440_v14 = vpack.c.bf16 %v91_v12, %v90_v11  ;;  %v75_v16 = vld [vmem:[#allocation5 + $0x28] sm:$0xff]  ;;  %v92_v17 = vld [vmem:[#allocation5 + $0xb0] sm:$0xff]  ;;  %v93_v18 = vld [vmem:[#allocation5 + $0xb8] sm:$0xff] }
  0x3c   :  { %437 = vmatprep.subr.bf16.mxu0 %v436_v8  ;;  %v442_v19 = vpack.c.bf16 %v75_v16, %v74_v15  ;;  %v444_v20 = vpack.c.bf16 %v93_v18, %v92_v17  ;;  %v76_v21 = vld [vmem:[#allocation5 + $0x30] sm:$0xff]  ;;  %v77_v22 = vld [vmem:[#allocation5 + $0x38] sm:$0xff]  ;;  %v94_v23 = vld [vmem:[#allocation5 + $0xc0] sm:$0xff]  ;;  %p577_p13 = por %p576_p12, %p575_p11 }
  0x3d   :  { %v95_v24 = vld [vmem:[#allocation5 + $0xc8] sm:$0xff]  ;;  %v446_v26 = vpack.c.bf16 %v77_v22, %v76_v21  ;;  %v78_v27 = vld [vmem:[#allocation5 + $0x40] sm:$0xff]  ;;  %v96_v30 = vld [vmem:[#allocation5 + $0xd0] sm:$0xff] }
  0x3e   :  { %v63_v25 = vld [vmem:[#allocation2 + $0x8] sm:$0xff]  ;;  %v448_v29 = vpack.c.bf16 %v95_v24, %v94_v23  ;;  %v198_v31 = vld [vmem:[#allocation7] sm:$0xff]  ;;  %v97_v33 = vld [vmem:[#allocation5 + $0xd8] sm:$0xff]  ;;  %p578_p0 = pnand %p577_p13, %p571_p10 }
  0x3f   :  { %439 = vmatpush3.bf16.msra.mxu0 %v438_v13  ;;  %173 = vmatprep.mubr.f32.mxu0 %v63_v25  ;;  %v79_v28 = vld [vmem:[#allocation5 + $0x48] sm:$0xff]  ;;  %v200_v35 = vld [vmem:[#allocation7 + $0x10] sm:$0xff]  ;;  %v201_v36 = vld [vmem:[#allocation7 + $0x18] sm:$0xff]  ;;  %v452_v41 = vpack.c.bf16 %v97_v33, %v96_v30 }
  0x40   :  { %441 = vmatprep.subr.bf16.mxu0 %v440_v14  ;;  %v199_v32 = vld [vmem:[#allocation7 + $0x8] sm:$0xff]  ;;  %v468_v37 = vpack.c.bf16 %v201_v36, %v200_v35  ;;  %v202_v38 = vld [vmem:[#allocation7 + $0x20] sm:$0xff]  ;;  %v450_v40 = vpack.c.bf16 %v79_v28, %v78_v27  ;;  %v80_v42 = vld [vmem:[#allocation5 + $0x50] sm:$0xff] }
  0x41   :  { %v464_v34 = vpack.c.bf16 %v199_v32, %v198_v31  ;;  %v203_v39 = vld [vmem:[#allocation7 + $0x28] sm:$0xff]  ;;  %v81_v43 = vld [vmem:[#allocation5 + $0x58] sm:$0xff]  ;;  %v98_v44 = vld [vmem:[#allocation5 + $0xe0] sm:$0xff] }
  0x42   :  { %v99_v45 = vld [vmem:[#allocation5 + $0xe8] sm:$0xff]  ;;  %v472_v46 = vpack.c.bf16 %v203_v39, %v202_v38  ;;  %v204_v47 = vld [vmem:[#allocation7 + $0x30] sm:$0xff]  ;;  %v205_v48 = vld [vmem:[#allocation7 + $0x38] sm:$0xff]  ;;  %v454_v49 = vpack.c.bf16 %v81_v43, %v80_v42 }
  0x43   :  { %443 = vmatpush3.bf16.msra.mxu0 %v442_v19  ;;  %465 = vmatprep.subr.bf16.mxu1 %v464_v34  ;;  %v456_v50 = vpack.c.bf16 %v99_v45, %v98_v44  ;;  %v82_v51 = vld [vmem:[#allocation5 + $0x60] sm:$0xff]  ;;  %v83_v52 = vld [vmem:[#allocation5 + $0x68] sm:$0xff]  ;;  %v100_v53 = vld [vmem:[#allocation5 + $0xf0] sm:$0xff]  ;;  %v476_v55 = vpack.c.bf16 %v205_v48, %v204_v47 }
  0x44   :  { %445 = vmatprep.subr.bf16.mxu0 %v444_v20  ;;  %467 = vmatpush3.bf16.msra.mxu1 %v464_v34  ;;  %v101_v54 = vld [vmem:[#allocation5 + $0xf8] sm:$0xff]  ;;  %v206_v56 = vld [vmem:[#allocation7 + $0x40] sm:$0xff]  ;;  %v207_v57 = vld [vmem:[#allocation7 + $0x48] sm:$0xff]  ;;  %v458_v58 = vpack.c.bf16 %v83_v52, %v82_v51 }
  0x45   :  { %469 = vmatprep.subr.bf16.mxu1 %v468_v37  ;;  %v460_v59 = vpack.c.bf16 %v101_v54, %v100_v53  ;;  %v84_v60 = vld [vmem:[#allocation5 + $0x70] sm:$0xff]  ;;  %v85_v61 = vld [vmem:[#allocation5 + $0x78] sm:$0xff]  ;;  %v480_v62 = vpack.c.bf16 %v207_v57, %v206_v56  ;;  %v62_v0 = vld [vmem:[#allocation2] sm:$0xff] }
  0x46   :  { %v462_v63 = vpack.c.bf16 %v85_v61, %v84_v60  ;;  %v65_v1 = vld [vmem:[#allocation2 + $0x18] sm:$0xff]  ;;  %v64_v2 = vld [vmem:[#allocation2 + $0x10] sm:$0xff]  ;;  %v67_v3 = vld [vmem:[#allocation2 + $0x28] sm:$0xff] }
  0x47   :  { %447 = vmatpush3.bf16.msra.mxu0 %v446_v26  ;;  %v66_v4 = vld [vmem:[#allocation2 + $0x20] sm:$0xff]  ;;  %v69_v5 = vld [vmem:[#allocation2 + $0x38] sm:$0xff]  ;;  %v68_v6 = vld [vmem:[#allocation2 + $0x30] sm:$0xff] }
  0x48   :  { %449 = vmatprep.subr.bf16.mxu0 %v448_v29  ;;  %471 = vmatpush3.bf16.msra.mxu1 %v468_v37  ;;  %v208_v7 = vld [vmem:[#allocation7 + $0x50] sm:$0xff]  ;;  %v209_v8 = vld [vmem:[#allocation7 + $0x58] sm:$0xff]  ;;  %v210_v10 = vld [vmem:[#allocation7 + $0x60] sm:$0xff] }
  0x49   :  { %473 = vmatprep.subr.bf16.mxu1 %v472_v46  ;;  %v484_v9 = vpack.c.bf16 %v209_v8, %v208_v7  ;;  %v211_v11 = vld [vmem:[#allocation7 + $0x68] sm:$0xff]  ;;  %v212_v13 = vld [vmem:[#allocation7 + $0x70] sm:$0xff]  ;;  %v213_v14 = vld [vmem:[#allocation7 + $0x78] sm:$0xff] }
  0x4a   :  { %v488_v12 = vpack.c.bf16 %v211_v11, %v210_v10  ;;  %v492_v15 = vpack.c.bf16 %v213_v14, %v212_v13  ;;  %v328_v18 = vld [vmem:[%s701_s2] ss:$0 sm:$0xff] }
  0x4b   :  { %451 = vmatpush3.bf16.msra.mxu0 %v450_v40  ;;  %v329_v37 = vld [vmem:[%s703_s4] ss:$0 sm:$0xff] }
  0x4c   :  { %453 = vmatprep.subr.bf16.mxu0 %v452_v41  ;;  %475 = vmatpush3.bf16.msra.mxu1 %v472_v46 }
  0x4d   :  { %477 = vmatprep.subr.bf16.mxu1 %v476_v55 }
  0x4f   :  { %455 = vmatpush3.bf16.msra.mxu0 %v454_v49 }
  0x50   :  { %457 = vmatprep.subr.bf16.mxu0 %v456_v50  ;;  %479 = vmatpush3.bf16.msra.mxu1 %v476_v55 }
  0x51   :  { %481 = vmatprep.subr.bf16.mxu1 %v480_v62 }
  0x53   :  { %459 = vmatpush3.bf16.msra.mxu0 %v458_v58 }
  0x54   :  { %461 = vmatprep.subr.bf16.mxu0 %v460_v59  ;;  %483 = vmatpush3.bf16.msra.mxu1 %v480_v62 }
  0x55   :  { %485 = vmatprep.subr.bf16.mxu1 %v484_v9 }
  0x57   :  { %463 = vmatpush3.bf16.msra.mxu0 %v462_v63 }
  0x58   :  { %487 = vmatpush3.bf16.msra.mxu1 %v484_v9 }
  0x59   :  { %489 = vmatprep.subr.bf16.mxu1 %v488_v12 }
  0x5a   :  { %174 = vmatmul.mubr.f32.vlgmr.msra.gmra.mrb[0].mxu0 %v62_v0 }
  0x5b   :  { %178 = vmatprep.mubr.f32.mxu0 %v65_v1 }
  0x5c   :  { %491 = vmatpush3.bf16.msra.mxu1 %v488_v12 }
  0x5d   :  { %493 = vmatprep.subr.bf16.mxu1 %v492_v15 }
  0x5e   :  { %179 = vmatmul.mubr.f32.gmra.mrb[2].mxu0 %v64_v2 }
  0x5f   :  { %183 = vmatprep.mubr.f32.mxu0 %v67_v3 }
  0x60   :  { %495 = vmatpush3.bf16.msra.mxu1 %v492_v15 }
  0x62   :  { %184 = vmatmul.mubr.f32.gmra.mrb[4].mxu0 %v66_v4 }
  0x63   :  { %188 = vmatprep.mubr.f32.mxu0 %v69_v5 }
  0x66   :  { %189 = vmatmul.mubr.f32.gmra.mrb[6].mxu0 %v68_v6 }
 0x12d   :  { %v362_v16 = vpop.f32.mrb[0].mxu0 }
 0x12e   :  { %v363_v17 = vpop.f32.mrb[1].mxu0 }
 0x12f   :  { %v364_v19 = vadd.f32 %v363_v17, %v362_v16 }
 0x131   :  { %v365_v20 = vpop.f32.mrb[2].mxu0  ;;  %v176_v21 = vadd.f32 %v364_v19, %v328_v18 }
 0x132   :  { %v366_v22 = vpop.f32.mrb[3].mxu0 }
 0x133   :  { %v367_v23 = vadd.f32 %v366_v22, %v365_v20  ;;  %v194_v24 = vmax.f32 %v176_v21, 0.0 }
 0x135   :  { %v181_v25 = vadd.f32 %v367_v23, %v328_v18  ;;  %v368_v26 = vpop.f32.mrb[4].mxu0  ;;  %426 = vmatprep.mubr.f32.mxu1 %v194_v24 }
 0x136   :  { %v369_v27 = vpop.f32.mrb[5].mxu0 }
 0x137   :  { %v195_v28 = vmax.f32 %v181_v25, 0.0  ;;  %v370_v29 = vadd.f32 %v369_v27, %v368_v26 }
 0x139   :  { %v186_v30 = vadd.f32 %v370_v29, %v328_v18  ;;  %v371_v31 = vpop.f32.mrb[6].mxu0  ;;  %427 = vmatmul.mubr.f32.vlgmr.msra.gmra.mrb[0].mxu1 %v195_v28 }
 0x13a   :  { %v372_v32 = vpop.f32.mrb[7].mxu0 }
 0x13b   :  { %v196_v33 = vmax.f32 %v186_v30, 0.0  ;;  %v373_v34 = vadd.f32 %v372_v32, %v371_v31 }
 0x13d   :  { %v191_v35 = vadd.f32 %v373_v34, %v328_v18  ;;  %429 = vmatprep.mubr.f32.mxu1 %v196_v33 }
 0x13f   :  { %v197_v36 = vmax.f32 %v191_v35, 0.0 }
 0x141   :  { %430 = vmatmul.mubr.f32.gmra.mrb[2].mxu1 %v197_v36 }
 0x20c   :  { %v428_v38 = vpop.f32.mrb[0].mxu1 }
 0x20d   :  { %v293_v39 = vadd.f32 %v428_v38, %v329_v37  ;;  %v287_v40 = vpop.f32.mrb[1].mxu1 }
 0x20e   :  { %v288_v41 = vadd.f32 %v329_v37, %v287_v40 }
 0x20f   :  { %307 = vst [vmem:[#allocation8 + $0x8] sm:$0xff] %v293_v39 }
 0x210   :  { %306 = vst [vmem:[#allocation8] sm:$0xff] %v288_v41 }
 0x214   :  { %v431_v42 = vpop.f32.mrb[2].mxu1 }
 0x215   :  { %v303_v43 = vadd.f32 %v431_v42, %v329_v37  ;;  %v297_v44 = vpop.f32.mrb[3].mxu1 }
 0x216   :  { %v298_v45 = vadd.f32 %v329_v37, %v297_v44 }
 0x217   :  { %309 = vst [vmem:[#allocation8 + $0x18] sm:$0xff] %v303_v43 }
 0x218   :  { %308 = vst [vmem:[#allocation8 + $0x10] sm:$0xff] %v298_v45 }
 0x219   :  { %581 = shalt.err (!%p578_p0)
}
 0x21a   :  { %s582_s14 = scalar_lea.hbm %s704_s5, 512 }
 0x21b   :  { %p583_p1 = scmp.ne.s32.totalorder %s704_s5, %s582_s14  ;;  %p586_p2 = scmp.lt.u32.totalorder %s582_s14, %s704_s5 }
 0x21d   :  { %p588_p3 = pnand %p586_p2, %p583_p1 }
 0x21f   :  { %591 = shalt.err (!%p588_p3)
}
 0x220   :  { %321 = dma.vmem_to_hbm [thread:$0]  %s316_s11, 512, %s704_s5, [#allocation4], %s599_s28, %s599_s28, %s600_s29  }
 0x221   :  { %596 = dma.done.wait [#allocation4], 512  }
 0x222   :  { %597 = vsyncadd [#allocation4], 4294966784 }
 0x223   :  { %325 = vsyncpa [#allocation3], 1 }
 0x224   :  { %326 = vsyncpa [#allocation6], 1 }
 0x225   :  { %327 = vsyncpa [#allocation4], 1 }

</bundles_post_ra>
